<compile_context>
chip_gen: v7x
topology: tpu7x:2x2x1
jax: 0.10.0
libtpu: 0.0.40
codegen_flags: <defaults>
</compile_context>

<pallas_src>
import jax
import jax.numpy as jnp
from jax.experimental import pallas as pl
from jax.experimental.pallas import tpu as pltpu


def _dma_copy_kernel(x_hbm, o_hbm, sem):
    # One HBM->HBM DMA descriptor: copy the whole input into out[0, ...].
    # No VMEM staging, no grid, no vector loads/stores.
    cp = pltpu.make_async_copy(x_hbm, o_hbm.at[0], sem)
    cp.start()
    cp.wait()


def _unsqueeze_copy(x: jax.Array) -> jax.Array:
    out_shape = (1,) + tuple(x.shape)
    return pl.pallas_call(
        _dma_copy_kernel,
        out_shape=jax.ShapeDtypeStruct(out_shape, x.dtype),
        in_specs=[pl.BlockSpec(memory_space=pl.ANY)],
        out_specs=pl.BlockSpec(memory_space=pl.ANY),
        scratch_shapes=[pltpu.SemaphoreType.DMA],
    )(x)


# jit so pallas dispatch + any surrounding reshapes are compiled once and
# fused; the input is NOT donated, so the caller's x stays valid.
_unsqueeze_copy_jit = jax.jit(_unsqueeze_copy)


def ensure_channel(x: jax.Array) -> jax.Array:
    """Pallas implementation of EnsureChannel.forward."""
    if x.ndim >= 4:
        # Already batched: pure identity, no kernel, no HBM traffic.
        return x
    # ndim < 4: produce (1,) + x.shape via one direct HBM->HBM DMA.
    return _unsqueeze_copy_jit(x)


if __name__ == "__main__":
    key = jax.random.PRNGKey(0)
    k1, k2 = jax.random.split(key)

    # Case 1: 3-D input (C, H, W) -> expect (1, C, H, W); runs the DMA kernel.
    x3 = jax.random.normal(k1, (4, 16, 16), dtype=jnp.float32)
    y3 = jax.block_until_ready(ensure_channel(x3))
    assert y3.shape == (1, 4, 16, 16), y3.shape
    assert jnp.array_equal(y3[0], x3), "data mismatch for 3-D input"

    # Case 2: 4-D input (N, C, H, W) -> unchanged; zero-cost early return.
    x4 = jax.random.normal(k2, (2, 4, 16, 16), dtype=jnp.float32)
    y4 = jax.block_until_ready(ensure_channel(x4))
    assert y4.shape == (2, 4, 16, 16), y4.shape
    assert jnp.array_equal(y4, x4), "data mismatch for 4-D input"

    print("KERNEL_OK")
</pallas_src>

<mosaic_0001>
module attributes {stable_mosaic.version = 11 : i64} {
  func.func @_dma_copy_kernel(%arg0: memref<4x16x16xf32, #tpu.memory_space<any>>, %arg1: memref<1x4x16x16xf32, #tpu.memory_space<any>>, %arg2: memref<!tpu.dma_semaphore, #tpu.memory_space<semaphore_mem>>) attributes {dimension_semantics = [], scalar_prefetch = 0 : i64, scratch_operands = 1 : i64, tpu.core_type = #tpu.core_type<tc>} {
    %c0_i32 = arith.constant 0 : i32
    %c0_i32_0 = arith.constant 0 : i32
    %c0_i32_1 = arith.constant 0 : i32
    %c0_i32_2 = arith.constant 0 : i32
    %0 = tpu.memref_slice %arg1[%c0_i32, %c0_i32_0, %c0_i32_1, %c0_i32_2] : memref<1x4x16x16xf32, #tpu.memory_space<any>> -> memref<1x4x16x16xf32, #tpu.memory_space<any>>
    %1 = tpu.memref_squeeze %0 : memref<1x4x16x16xf32, #tpu.memory_space<any>> -> memref<4x16x16xf32, #tpu.memory_space<any>>
    tpu.enqueue_dma source(%arg0 : memref<4x16x16xf32, #tpu.memory_space<any>>) target(%1 : memref<4x16x16xf32, #tpu.memory_space<any>>) target_semaphore(%arg2 : memref<!tpu.dma_semaphore, #tpu.memory_space<semaphore_mem>>)
    %c0_i32_3 = arith.constant 0 : i32
    %c0_i32_4 = arith.constant 0 : i32
    %c0_i32_5 = arith.constant 0 : i32
    %c0_i32_6 = arith.constant 0 : i32
    %2 = tpu.memref_slice %arg1[%c0_i32_3, %c0_i32_4, %c0_i32_5, %c0_i32_6] : memref<1x4x16x16xf32, #tpu.memory_space<any>> -> memref<1x4x16x16xf32, #tpu.memory_space<any>>
    %3 = tpu.memref_squeeze %2 : memref<1x4x16x16xf32, #tpu.memory_space<any>> -> memref<4x16x16xf32, #tpu.memory_space<any>>
    tpu.wait_dma2 semaphore(%arg2 : memref<!tpu.dma_semaphore, #tpu.memory_space<semaphore_mem>>) src(%arg0 : memref<4x16x16xf32, #tpu.memory_space<any>>) dst(%3 : memref<4x16x16xf32, #tpu.memory_space<any>>)
    return
  }
}

</mosaic_0001>

<bundles_post_ra>
// kernel: _unsqueeze_copy.1
= control target key start
LH: loop header
LB: loop body
LE: loop exit
PB: predicated region body
PF: predicated region fallthrough
CT: control target
= control target key end

     0   :  { %s35_s6 = smov [#allocation2]   ;;  %s36_s7 = smov [#allocation3]   ;;  %s54_s0 = inlined_call_operand.hbm [shape: f32[4,16,16], index: 0, kind: input, shape index: {}]   ;;  %s55_s1 = inlined_call_operand.hbm [shape: f32[1,4,16,16], index: 1, kind: output, shape index: {}]  }
   0x1   :  { %s37_s8 = smov 0  }
   0x2   :  { %18 = dma.general %s54_s0, 1024, %s55_s1, %s35_s6, %s36_s7, [#allocation4], %s37_s8, 0  }
   0x3   :  { %33 = dma.done.wait [#allocation2], 1024 }
   0x4   :  { %34 = vsyncadd [#allocation2], 4294966272 }
   0x5   :  { %23 = vsyncmov [#allocation2] }
   0x8   :  { %s24_s13 = vpop.sfrf %23 }
   0x9   :  { %p29_p0 = scmp.ne.s32.totalorder %s24_s13, 0 }
   0xb   :  { %28 = shalt.err (%p29_p0)  }

</bundles_post_ra>
